<compile_context>
chip_gen: v7x
topology: tpu7x:2x2x1
jax: 0.10.0
libtpu: 0.0.40
codegen_flags: <defaults>
</compile_context>

<pallas_src>
import jax
import jax.numpy as jnp
from jax.experimental import pallas as pl
from jax.experimental.pallas import tpu as pltpu

HIDDEN = 100
HIDDEN_PAD = 128  # pad 100 -> 128 so the hidden axis is lane-aligned


def mlp_probe_kernel(x_ref, w1_ref, b1_ref, w2_ref, b2_ref, o_ref):
    # x: (TB, d)  w1: (d, HIDDEN_PAD) [compute dtype]  b1: (1, HIDDEN_PAD) f32
    # w2: (1, HIDDEN_PAD) f32 (row)   b2: (1, 1) f32   o: (TB, 1) f32
    x = x_ref[...]
    if x.dtype != w1_ref.dtype:
        # Only taken for the opt-in f32-activation / bf16-compute path (v5e).
        x = x.astype(w1_ref.dtype)
    h = jnp.dot(x, w1_ref[...], preferred_element_type=jnp.float32) + b1_ref[...]
    h = jnp.maximum(h, 0.0)                                     # ReLU (VPU)
    # Second projection as VPU multiply + lane reduction (XLU slot has slack),
    # avoiding a (tb,128)@(128,1) matmul that uses 1/256 of the MXU.
    o = jnp.sum(h * w2_ref[...], axis=-1, keepdims=True) + b2_ref[...]
    o_ref[...] = jax.nn.sigmoid(o).astype(o_ref.dtype)          # sigmoid (EUP)


def prepare_params(w1, b1, w2, b2, *, compute_dtype=jnp.float32):
    """One-time padding 100 -> 128 and optional first-matmul dtype cast."""
    d = w1.shape[0]
    w1p = (jnp.zeros((d, HIDDEN_PAD), jnp.float32)
           .at[:, :HIDDEN].set(w1).astype(compute_dtype))
    b1p = (jnp.zeros((1, HIDDEN_PAD), jnp.float32)
           .at[:, :HIDDEN].set(jnp.reshape(b1, (1, HIDDEN))))
    w2r = (jnp.zeros((1, HIDDEN_PAD), jnp.float32)
           .at[:, :HIDDEN].set(jnp.reshape(w2, (1, HIDDEN))))
    b2p = jnp.asarray(b2, jnp.float32).reshape(1, 1)
    return w1p, b1p, w2r, b2p


def _round_up(v, m):
    return ((v + m - 1) // m) * m


def _vmem_capacity_bytes():
    try:
        return int(pltpu.get_tpu_info().vmem_capacity_bytes)
    except Exception:
        return 64 << 20  # conservative: v7x per-TensorCore VMEM


def _pick_batch_tile(B, d, x_itemsize, cast_itemsize, comp_itemsize, budget):
    """Largest batch tile fitting the per-generation VMEM budget, targeting a
    ~8 MiB x tile and >=2 grid steps for large B (both v7x TensorCores)."""
    resident = d * HIDDEN_PAD * comp_itemsize + 3 * HIDDEN_PAD * 4  # 1-buf weights
    headroom = 4 << 20
    avail = max(budget - resident - headroom, 0)
    per_row = (2 * d * x_itemsize          # x tile, double-buffered
               + d * cast_itemsize         # in-kernel x->compute-dtype copy (if any)
               + 2 * HIDDEN_PAD * 4        # f32 hidden activation + epilogue temp
               + 2 * 128 * 4)              # lane-padded (tb,1) out blocks, 2 bufs
    tb_fit = avail // per_row
    tb_target = max(512, (8 << 20) // max(d * x_itemsize, 1))      # ~8 MiB x tile
    tb = max(8, min(tb_fit, tb_target))
    if B >= 1024:
        # Guarantee >=2 grid steps so both v7x TensorCores get work.
        tb = min(tb, _round_up(-(-B // 2), 8))
    tb = max(8, (tb // 8) * 8)
    return B if B <= tb else tb


def mlp_probe(x, w1p, b1p, w2r, b2p, *, tb=None):
    """x: (B, d) float; padded params from prepare_params()."""
    B, d = x.shape
    # bf16 activations: do the first matmul in bf16 (one-time weight downcast)
    # instead of upcasting every streamed x tile to f32.
    if x.dtype == jnp.bfloat16 and w1p.dtype != jnp.bfloat16:
        w1p = w1p.astype(jnp.bfloat16)

    x_itemsize = x.dtype.itemsize
    comp_itemsize = w1p.dtype.itemsize
    cast_itemsize = comp_itemsize if x.dtype != w1p.dtype else 0

    physical = _vmem_capacity_bytes()
    budget_cap = min(physical - (16 << 20), (physical * 3) // 4)   # ~48 MiB on v7x

    if tb is None:
        tb = _pick_batch_tile(B, d, x_itemsize, cast_itemsize,
                              comp_itemsize, budget_cap)
    tb = max(1, min(tb, B))
    grid = (pl.cdiv(B, tb),)

    def build(single_buffer_weights):
        w_bufs = 1 if single_buffer_weights else 2
        needed = (
            2 * tb * d * x_itemsize                 # x tiles (double-buffered)
            + tb * d * cast_itemsize                # in-kernel cast copy (if any)
            + 2 * tb * HIDDEN_PAD * 4               # f32 hidden + epilogue temp
            + 2 * tb * 128 * 4                      # lane-padded out blocks
            + w_bufs * (d * HIDDEN_PAD * comp_itemsize + 3 * HIDDEN_PAD * 4)
            + (4 << 20)                             # compiler scratch headroom
        )
        vmem_limit = int(min(budget_cap, max(needed, 24 << 20)))

        def wspec(shape):
            if single_buffer_weights:
                return pl.BlockSpec(shape, lambda i: (0, 0),
                                    pipeline_mode=pl.Buffered(1))
            return pl.BlockSpec(shape, lambda i: (0, 0))

        return pl.pallas_call(
            mlp_probe_kernel,
            out_shape=jax.ShapeDtypeStruct((B, 1), jnp.float32),
            grid=grid,
            in_specs=[
                pl.BlockSpec((tb, d), lambda i: (i, 0)),   # streamed x
                wspec((d, HIDDEN_PAD)),                    # resident w1
                wspec((1, HIDDEN_PAD)),                    # resident b1
                wspec((1, HIDDEN_PAD)),                    # resident w2 row
                wspec((1, 1)),                             # resident b2
            ],
            out_specs=pl.BlockSpec((tb, 1), lambda i: (i, 0)),
            compiler_params=pltpu.CompilerParams(
                dimension_semantics=("parallel",),  # both TCs on v7x
                vmem_limit_bytes=vmem_limit,
            ),
        )

    try:
        return build(True)(x, w1p, b1p, w2r, b2p)
    except Exception:
        # Toolchains without BlockSpec.pipeline_mode: fall back to default
        # double-buffered weights (correctness unchanged).
        return build(False)(x, w1p, b1p, w2r, b2p)


def init_params(key, d):
    """Deterministic init mirroring nn.Linear's uniform(-1/sqrt(fan_in), ...)."""
    k1, k2, k3, k4 = jax.random.split(key, 4)
    bound1 = 1.0 / jnp.sqrt(jnp.float32(d))
    bound2 = 1.0 / jnp.sqrt(jnp.float32(HIDDEN))
    w1 = jax.random.uniform(k1, (d, HIDDEN), jnp.float32, -bound1, bound1)
    b1 = jax.random.uniform(k2, (HIDDEN,), jnp.float32, -bound1, bound1)
    w2 = jax.random.uniform(k3, (HIDDEN, 1), jnp.float32, -bound2, bound2)
    b2 = jax.random.uniform(k4, (1,), jnp.float32, -bound2, bound2)
    return w1, b1, w2, b2


if __name__ == "__main__":
    key = jax.random.PRNGKey(0)
    kx, kp = jax.random.split(key)

    B, d = 8, 32
    x = jax.random.normal(kx, (B, d), jnp.float32)
    w1, b1, w2, b2 = init_params(kp, d)
    params = prepare_params(w1, b1, w2, b2)

    def ref_fn(xf):
        return jax.nn.sigmoid(jnp.maximum(xf @ w1 + b1, 0.0) @ w2 + b2)

    # f32 path (exact numerics vs. reference).
    out = jax.block_until_ready(mlp_probe(x, *params))
    assert out.shape == (B, 1)
    assert jnp.allclose(out, ref_fn(x), atol=1e-5, rtol=1e-5)

    # Multi-tile grid + remainder-block masking path.
    B2 = 20
    x2 = jax.random.normal(jax.random.PRNGKey(1), (B2, d), jnp.float32)
    out2 = jax.block_until_ready(mlp_probe(x2, *params, tb=8))
    assert out2.shape == (B2, 1)
    assert jnp.allclose(out2, ref_fn(x2), atol=1e-5, rtol=1e-5)

    # bf16-activation path (bf16 x bf16 MXU matmul, f32 accumulation).
    params_bf16 = prepare_params(w1, b1, w2, b2, compute_dtype=jnp.bfloat16)
    out3 = jax.block_until_ready(mlp_probe(x.astype(jnp.bfloat16), *params_bf16))
    assert out3.shape == (B, 1)
    assert jnp.allclose(out3, ref_fn(x), atol=3e-2, rtol=3e-2)

    print("KERNEL_OK")
</pallas_src>

<mosaic_0001>
module attributes {stable_mosaic.version = 11 : i64} {
  func.func @mlp_probe_kernel(%arg0: i32, %arg1: memref<8x32xf32, #tpu.memory_space<vmem>>, %arg2: memref<32x128xf32, #tpu.memory_space<vmem>>, %arg3: memref<1x128xf32, #tpu.memory_space<vmem>>, %arg4: memref<1x128xf32, #tpu.memory_space<vmem>>, %arg5: memref<1x1xf32, #tpu.memory_space<vmem>>, %arg6: memref<8x1xf32, #tpu.memory_space<vmem>>) attributes {dimension_semantics = [#tpu.dimension_semantics<parallel>], iteration_bounds = array<i64: 1>, scalar_prefetch = 0 : i64, scratch_operands = 0 : i64, tpu.core_type = #tpu.core_type<tc>, window_params = [{transform_indices = @transform_0, window_bounds = array<i64: 8, 32>}, {pipeline_mode = #tpu.pipeline_mode<synchronous>, transform_indices = @transform_1, window_bounds = array<i64: 32, 128>}, {pipeline_mode = #tpu.pipeline_mode<synchronous>, transform_indices = @transform_2, window_bounds = array<i64: 1, 128>}, {pipeline_mode = #tpu.pipeline_mode<synchronous>, transform_indices = @transform_3, window_bounds = array<i64: 1, 128>}, {pipeline_mode = #tpu.pipeline_mode<synchronous>, transform_indices = @transform_4, window_bounds = array<i64: 1, 1>}, {transform_indices = @transform_5, window_bounds = array<i64: 8, 1>}]} {
    %c0 = arith.constant 0 : index
    %c0_0 = arith.constant 0 : index
    %0 = vector.load %arg1[%c0, %c0_0] : memref<8x32xf32, #tpu.memory_space<vmem>>, vector<8x32xf32>
    %c0_1 = arith.constant 0 : index
    %c0_2 = arith.constant 0 : index
    %1 = vector.load %arg2[%c0_1, %c0_2] : memref<32x128xf32, #tpu.memory_space<vmem>>, vector<32x128xf32>
    %cst = arith.constant dense<0.000000e+00> : vector<8x128xf32>
    %2 = tpu.matmul %0, %1, %cst {dimension_numbers = #tpu.dot_dimension_numbers<[1], [0], [0], [1], [0, 0, 1, 1], [], []>} : vector<8x32xf32>, vector<32x128xf32>, vector<8x128xf32> -> vector<8x128xf32>
    %c0_3 = arith.constant 0 : index
    %c0_4 = arith.constant 0 : index
    %3 = vector.load %arg3[%c0_3, %c0_4] : memref<1x128xf32, #tpu.memory_space<vmem>>, vector<1x128xf32>
    %4 = vector.broadcast %3 : vector<1x128xf32> to vector<8x128xf32>
    %5 = arith.addf %2, %4 : vector<8x128xf32>
    %cst_5 = arith.constant 0.000000e+00 : f32
    %6 = vector.broadcast %cst_5 : f32 to vector<8x128xf32>
    %7 = arith.maximumf %5, %6 : vector<8x128xf32>
    %c0_6 = arith.constant 0 : index
    %c0_7 = arith.constant 0 : index
    %8 = vector.load %arg4[%c0_6, %c0_7] : memref<1x128xf32, #tpu.memory_space<vmem>>, vector<1x128xf32>
    %9 = vector.broadcast %8 : vector<1x128xf32> to vector<8x128xf32>
    %10 = arith.mulf %7, %9 : vector<8x128xf32>
    %cst_8 = arith.constant dense<0.000000e+00> : vector<8xf32>
    %11 = vector.multi_reduction <add>, %10, %cst_8 [1] : vector<8x128xf32> to vector<8xf32>
    %12 = vector.shape_cast %11 : vector<8xf32> to vector<8x1xf32>
    %c0_9 = arith.constant 0 : index
    %c0_10 = arith.constant 0 : index
    %13 = vector.load %arg5[%c0_9, %c0_10] : memref<1x1xf32, #tpu.memory_space<vmem>>, vector<1x1xf32>
    %14 = vector.broadcast %13 : vector<1x1xf32> to vector<8x1xf32>
    %15 = arith.addf %12, %14 : vector<8x1xf32>
    %16 = arith.negf %15 : vector<8x1xf32>
    %17 = math.exp %16 : vector<8x1xf32>
    %cst_11 = arith.constant 1.000000e+00 : f32
    %18 = vector.broadcast %cst_11 : f32 to vector<8x1xf32>
    %19 = arith.addf %18, %17 : vector<8x1xf32>
    %20 = arith.divf %18, %19 : vector<8x1xf32>
    %c0_12 = arith.constant 0 : index
    %c0_13 = arith.constant 0 : index
    %21 = vector.load %arg6[%c0_12, %c0_13] : memref<8x1xf32, #tpu.memory_space<vmem>>, vector<8x1xf32>
    tpu.vector_store %arg6[%c0_12, %c0_13], %20 {strides = array<i32>} : memref<8x1xf32, #tpu.memory_space<vmem>>, vector<8x1xf32>,
    return
  }
  func.func @transform_0(%arg0: i32) -> (i32, i32) {
    %c0_i32 = arith.constant 0 : i32
    %c0_i32_0 = arith.constant 0 : i32
    return %arg0, %c0_i32 : i32, i32
  }
  func.func @transform_1(%arg0: i32) -> (i32, i32) {
    %c0_i32 = arith.constant 0 : i32
    %c0_i32_0 = arith.constant 0 : i32
    %c0_i32_1 = arith.constant 0 : i32
    return %c0_i32, %c0_i32_0 : i32, i32
  }
  func.func @transform_2(%arg0: i32) -> (i32, i32) {
    %c0_i32 = arith.constant 0 : i32
    %c0_i32_0 = arith.constant 0 : i32
    %c0_i32_1 = arith.constant 0 : i32
    return %c0_i32, %c0_i32_0 : i32, i32
  }
  func.func @transform_3(%arg0: i32) -> (i32, i32) {
    %c0_i32 = arith.constant 0 : i32
    %c0_i32_0 = arith.constant 0 : i32
    %c0_i32_1 = arith.constant 0 : i32
    return %c0_i32, %c0_i32_0 : i32, i32
  }
  func.func @transform_4(%arg0: i32) -> (i32, i32) {
    %c0_i32 = arith.constant 0 : i32
    %c0_i32_0 = arith.constant 0 : i32
    %c0_i32_1 = arith.constant 0 : i32
    return %c0_i32, %c0_i32_0 : i32, i32
  }
  func.func @transform_5(%arg0: i32) -> (i32, i32) {
    %c0_i32 = arith.constant 0 : i32
    %c0_i32_0 = arith.constant 0 : i32
    return %arg0, %c0_i32 : i32, i32
  }
}

module attributes {stable_mosaic.version = 11 : i64} {
  func.func @mlp_probe_kernel(%arg0: i32, %arg1: memref<8x32xf32, #tpu.memory_space<vmem>>, %arg2: memref<32x128xf32, #tpu.memory_space<vmem>>, %arg3: memref<1x128xf32, #tpu.memory_space<vmem>>, %arg4: memref<1x128xf32, #tpu.memory_space<vmem>>, %arg5: memref<1x1xf32, #tpu.memory_space<vmem>>, %arg6: memref<8x1xf32, #tpu.memory_space<vmem>>) attributes {dimension_semantics = [#tpu.dimension_semantics<parallel>], iteration_bounds = array<i64: 1>, scalar_prefetch = 0 : i64, scratch_operands = 0 : i64, tpu.core_type = #tpu.core_type<tc>, window_params = [{transform_indices = @transform_0, window_bounds = array<i64: 8, 32>}, {pipeline_mode = #tpu.pipeline_mode<synchronous>, transform_indices = @transform_1, window_bounds = array<i64: 32, 128>}, {pipeline_mode = #tpu.pipeline_mode<synchronous>, transform_indices = @transform_2, window_bounds = array<i64: 1, 128>}, {pipeline_mode = #tpu.pipeline_mode<synchronous>, transform_indices = @transform_3, window_bounds = array<i64: 1, 128>}, {pipeline_mode = #tpu.pipeline_mode<synchronous>, transform_indices = @transform_4, window_bounds = array<i64: 1, 1>}, {transform_indices = @transform_5, window_bounds = array<i64: 8, 1>}]} {
    %c0 = arith.constant 0 : index
    %c0_0 = arith.constant 0 : index
    %0 = vector.load %arg1[%c0, %c0_0] : memref<8x32xf32, #tpu.memory_space<vmem>>, vector<8x32xf32>
    %c0_1 = arith.constant 0 : index
    %c0_2 = arith.constant 0 : index
    %1 = vector.load %arg2[%c0_1, %c0_2] : memref<32x128xf32, #tpu.memory_space<vmem>>, vector<32x128xf32>
    %cst = arith.constant dense<0.000000e+00> : vector<8x128xf32>
    %2 = tpu.matmul %0, %1, %cst {dimension_numbers = #tpu.dot_dimension_numbers<[1], [0], [0], [1], [0, 0, 1, 1], [], []>} : vector<8x32xf32>, vector<32x128xf32>, vector<8x128xf32> -> vector<8x128xf32>
    %c0_3 = arith.constant 0 : index
    %c0_4 = arith.constant 0 : index
    %3 = vector.load %arg3[%c0_3, %c0_4] : memref<1x128xf32, #tpu.memory_space<vmem>>, vector<1x128xf32>
    %4 = vector.broadcast %3 : vector<1x128xf32> to vector<8x128xf32>
    %5 = arith.addf %2, %4 : vector<8x128xf32>
    %cst_5 = arith.constant 0.000000e+00 : f32
    %6 = vector.broadcast %cst_5 : f32 to vector<8x128xf32>
    %7 = arith.maximumf %5, %6 : vector<8x128xf32>
    %c0_6 = arith.constant 0 : index
    %c0_7 = arith.constant 0 : index
    %8 = vector.load %arg4[%c0_6, %c0_7] : memref<1x128xf32, #tpu.memory_space<vmem>>, vector<1x128xf32>
    %9 = vector.broadcast %8 : vector<1x128xf32> to vector<8x128xf32>
    %10 = arith.mulf %7, %9 : vector<8x128xf32>
    %cst_8 = arith.constant dense<0.000000e+00> : vector<8xf32>
    %11 = vector.multi_reduction <add>, %10, %cst_8 [1] : vector<8x128xf32> to vector<8xf32>
    %12 = vector.shape_cast %11 : vector<8xf32> to vector<8x1xf32>
    %c0_9 = arith.constant 0 : index
    %c0_10 = arith.constant 0 : index
    %13 = vector.load %arg5[%c0_9, %c0_10] : memref<1x1xf32, #tpu.memory_space<vmem>>, vector<1x1xf32>
    %14 = vector.broadcast %13 : vector<1x1xf32> to vector<8x1xf32>
    %15 = arith.addf %12, %14 : vector<8x1xf32>
    %16 = arith.negf %15 : vector<8x1xf32>
    %17 = math.exp %16 : vector<8x1xf32>
    %cst_11 = arith.constant 1.000000e+00 : f32
    %18 = vector.broadcast %cst_11 : f32 to vector<8x1xf32>
    %19 = arith.addf %18, %17 : vector<8x1xf32>
    %20 = arith.divf %18, %19 : vector<8x1xf32>
    %c0_12 = arith.constant 0 : index
    %c0_13 = arith.constant 0 : index
    %21 = vector.load %arg6[%c0_12, %c0_13] : memref<8x1xf32, #tpu.memory_space<vmem>>, vector<8x1xf32>
    tpu.vector_store %arg6[%c0_12, %c0_13], %20 {strides = array<i32>} : memref<8x1xf32, #tpu.memory_space<vmem>>, vector<8x1xf32>,
    return
  }
  func.func @transform_0(%arg0: i32) -> (i32, i32) {
    %c0_i32 = arith.constant 0 : i32
    %c0_i32_0 = arith.constant 0 : i32
    return %arg0, %c0_i32 : i32, i32
  }
  func.func @transform_1(%arg0: i32) -> (i32, i32) {
    %c0_i32 = arith.constant 0 : i32
    %c0_i32_0 = arith.constant 0 : i32
    %c0_i32_1 = arith.constant 0 : i32
    return %c0_i32, %c0_i32_0 : i32, i32
  }
  func.func @transform_2(%arg0: i32) -> (i32, i32) {
    %c0_i32 = arith.constant 0 : i32
    %c0_i32_0 = arith.constant 0 : i32
    %c0_i32_1 = arith.constant 0 : i32
    return %c0_i32, %c0_i32_0 : i32, i32
  }
  func.func @transform_3(%arg0: i32) -> (i32, i32) {
    %c0_i32 = arith.constant 0 : i32
    %c0_i32_0 = arith.constant 0 : i32
    %c0_i32_1 = arith.constant 0 : i32
    return %c0_i32, %c0_i32_0 : i32, i32
  }
  func.func @transform_4(%arg0: i32) -> (i32, i32) {
    %c0_i32 = arith.constant 0 : i32
    %c0_i32_0 = arith.constant 0 : i32
    %c0_i32_1 = arith.constant 0 : i32
    return %c0_i32, %c0_i32_0 : i32, i32
  }
  func.func @transform_5(%arg0: i32) -> (i32, i32) {
    %c0_i32 = arith.constant 0 : i32
    %c0_i32_0 = arith.constant 0 : i32
    return %arg0, %c0_i32 : i32, i32
  }
}

</mosaic_0001>

<bundles_post_ra>
// kernel: tpu_custom_call.1
= control target key start
LH: loop header
LB: loop body
LE: loop exit
PB: predicated region body
PF: predicated region fallthrough
CT: control target
= control target key end

     0   :  { %s333_s0 = inlined_call_operand.hbm [shape: f32[8,32], index: 0, kind: input, shape index: {}]   ;;  %s334_s1 = inlined_call_operand.hbm [shape: f32[32,128], index: 1, kind: input, shape index: {}]   ;;  %s335_s2 = inlined_call_operand.vmem [shape: f32[1,128], index: 2, kind: input, shape index: {}]   ;;  %s336_s3 = inlined_call_operand.vmem [shape: f32[1,128], index: 3, kind: input, shape index: {}]   ;;  %s337_s4 = inlined_call_operand.<no memory space> [shape: f32[1,1], index: 4, kind: input, shape index: {}]   ;;  %s338_s5 = inlined_call_operand.vmem [shape: f32[8,1], index: 5, kind: output, shape index: {}]  }
   0x1   :  { %v10_v0 = vstv %s337_s4 }
   0x2   :  { %11 = vst [vmem:[#allocation2] sm:$0x1] %v10_v0 }
   0x3   :  { %12 = vsyncpa [#allocation4], 0 }
   0x4   :  { %13 = vsyncpa [#allocation6], 0  ;;  %s253_s20 = smov [#allocation3]   ;;  %s254_s22 = smov [#allocation5]  }
   0x5   :  { %s20_s21 = sshll.u32 %s253_s20, 4  ;;  %s29_s23 = sshll.u32 %s254_s22, 4  ;;  %s21_s21 = int_to_ptr.vmem [resolvable:$true] %s20_s21  ;;  %s293_s23 = int_to_ptr.vmem [resolvable:$true] %s29_s23 }
   0x6   :  { %s205_s26 = scalar_lea.hbm %s333_s0, 128 }
   0x7   :  { %p206_p0 = scmp.ne.s32.totalorder %s333_s0, %s205_s26  ;;  %p209_p1 = scmp.lt.u32.totalorder %s205_s26, %s333_s0 }
   0x9   :  { %p211_p2 = pnand %p209_p1, %p206_p0 }
   0xb   :  { %214 = shalt.err (!%p211_p2)
}
   0xc   :  { %s215_s30 = scalar_lea.vmem %s21_s21, 128  ;;  %p220_p4 = scmp.lt.s32.totalorder %s21_s21, %s21_s21 }
   0xd   :  { %p216_p3 = scmp.ne.s32.totalorder %s21_s21, %s215_s30  ;;  %p221_p5 = scmp.lt.s32.totalorder %s215_s30, %s215_s30 }
   0xf   :  { %p222_p6 = por %p221_p5, %p220_p4 }
  0x11   :  { %p223_p7 = pnand %p222_p6, %p216_p3 }
  0x13   :  { %226 = shalt.err (!%p223_p7)
}
  0x14   :  { %23 = dma.hbm_to_vmem [thread:$0]  %s333_s0, 128, %s21_s21, [#allocation4]  }
  0x15   :  { %s227_s10 = scalar_lea.hbm %s334_s1, 512 }
  0x16   :  { %p228_p8 = scmp.ne.s32.totalorder %s334_s1, %s227_s10  ;;  %p231_p9 = scmp.lt.u32.totalorder %s227_s10, %s334_s1 }
  0x18   :  { %p233_p10 = pnand %p231_p9, %p228_p8 }
  0x1a   :  { %236 = shalt.err (!%p233_p10)
}
  0x1b   :  { %s237_s15 = scalar_lea.vmem %s293_s23, 512  ;;  %p242_p12 = scmp.lt.s32.totalorder %s293_s23, %s293_s23 }
  0x1c   :  { %p238_p11 = scmp.ne.s32.totalorder %s293_s23, %s237_s15  ;;  %p243_p13 = scmp.lt.s32.totalorder %s237_s15, %s237_s15 }
  0x1e   :  { %p244_p0 = por %p243_p13, %p242_p12 }
  0x20   :  { %p245_p1 = pnand %p244_p0, %p238_p11 }
  0x22   :  { %248 = shalt.err (!%p245_p1)
}
  0x23   :  { %s255_s0 = smov 128   ;;  %s256_s16 = smov 8  }
  0x24   :  { %35 = dma.hbm_to_vmem [thread:$0]  %s334_s1, 512, %s293_s23, [#allocation6], %s255_s0, %s255_s0, %s256_s16  }
  0x25   :  { %249 = dma.done.wait [#allocation4], 128  }
  0x26   :  { %250 = vsyncadd [#allocation4], 4294967168 }
  0x27   :  { %251 = dma.done.wait [#allocation6], 512  }
  0x28   :  { %252 = vsyncadd [#allocation6], 4294966784  ;;  %v257_v1 = vmov 0.0|0.0   ;;  %vm258_vm0 = vmmov 0   ;;  %v259_v2 = vmov 0.0   ;;  %v49_v3 = vld [vmem:[#allocation5] sm:$0xff] }
  0x29   :  { %188 = vmatprep.subr.bf16.mxu0 %v257_v1  ;;  %185 = vmatprep.mubr.msk.f32.mxu0 %vm258_vm0, %v259_v2  ;;  %v50_v4 = vld [vmem:[#allocation5 + $0x8] sm:$0xff]  ;;  %v51_v5 = vld [vmem:[#allocation5 + $0x10] sm:$0xff]  ;;  %v52_v7 = vld [vmem:[#allocation5 + $0x18] sm:$0xff]  ;;  %vm60_vm1 = vcmask 261120   ;;  %vm159_vm2 = vcmask 7168  }
  0x2a   :  { %v189_v6 = vpack.c.bf16 %v50_v4, %v49_v3  ;;  %v192_v8 = vpack.c.bf16 %v52_v7, %v51_v5  ;;  %v48_v9 = vld [vmem:[#allocation3] sm:$0xff]  ;;  %v167_v10 = vld [vmem:[%s335_s2] ss:$0 sm:$0xff] }
  0x2b   :  { %v169_v14 = vld [vmem:[%s336_s3] ss:$0 sm:$0xff] }
  0x2c   :  { %190 = vmatpush3.bf16.msra.mxu0 %v189_v6  ;;  %v170_v17 = vld [vmem:[#allocation2] ss:$0 sm:$0xff] }
  0x2d   :  { %191 = vmatprep.subr.bf16.mxu0 %v257_v1 }
  0x30   :  { %193 = vmatpush3.bf16.msra.mxu0 %v192_v8 }
  0x33   :  { %186 = vmatmul.mubr.msk.f32.vlgmr.msra.gmra.mrb[0].mxu0 %vm60_vm1, %v48_v9 }
 0x106   :  { %v130_v11 = vpop.f32.mrb[0].mxu0 }
 0x107   :  { %v131_v12 = vadd.f32 %v167_v10, %v130_v11  ;;  %v187_v13 = vpop.f32.mrb[1].mxu0 }
 0x109   :  { %v134_v15 = vmax.f32 %v131_v12, 0.0 }
 0x10b   :  { %v142_v16 = vmul.f32 %v169_v14, %v134_v15 }
 0x10d   :  { %143 = vadd.xlane.f32.xlu0 %v142_v16 }
 0x19a   :  { %v144_v18 = vpop.xlane.xlu0 %143 }
 0x19b   :  { %v152_v19 = vadd.f32 %v170_v17, %v144_v18 }
 0x19d   :  { %v171_v20 = vmul.f32 -1.442695, %v152_v19 }
 0x19f   :  { %201 = vpow2.f32 %v171_v20 }
 0x1a9   :  { %v202_v21 = vpop.eup %201 }
 0x1aa   :  { %v156_v22 = vadd.f32 1.0, %v202_v21 }
 0x1ac   :  { %203 = vrcp.f32 %v156_v22 }
 0x1b6   :  { %v204_v23 = vpop.eup %203 }
 0x1b7   :  { %160 = vst.msk [vmem:[%s338_s5] sm:$0xff] %vm159_vm2, %v204_v23 }
 0x1b8   :  { %165 = vsyncpa [#allocation4], 1 }
 0x1b9   :  { %166 = vsyncpa [#allocation6], 1 }

// kernel: tpu_custom_call.1
= control target key start
LH: loop header
LB: loop body
LE: loop exit
PB: predicated region body
PF: predicated region fallthrough
CT: control target
= control target key end

     0   :  { %s333_s0 = inlined_call_operand.hbm [shape: f32[8,32], index: 0, kind: input, shape index: {}]   ;;  %s334_s1 = inlined_call_operand.hbm [shape: f32[32,128], index: 1, kind: input, shape index: {}]   ;;  %s335_s2 = inlined_call_operand.vmem [shape: f32[1,128], index: 2, kind: input, shape index: {}]   ;;  %s336_s3 = inlined_call_operand.vmem [shape: f32[1,128], index: 3, kind: input, shape index: {}]   ;;  %s337_s4 = inlined_call_operand.<no memory space> [shape: f32[1,1], index: 4, kind: input, shape index: {}]   ;;  %s338_s5 = inlined_call_operand.vmem [shape: f32[8,1], index: 5, kind: output, shape index: {}]  }
   0x1   :  { %v10_v0 = vstv %s337_s4 }
   0x2   :  { %11 = vst [vmem:[#allocation2] sm:$0x1] %v10_v0 }
   0x3   :  { %12 = vsyncpa [#allocation4], 0 }
   0x4   :  { %13 = vsyncpa [#allocation6], 0  ;;  %s253_s20 = smov [#allocation3]   ;;  %s254_s22 = smov [#allocation5]  }
   0x5   :  { %s20_s21 = sshll.u32 %s253_s20, 4  ;;  %s29_s23 = sshll.u32 %s254_s22, 4  ;;  %s21_s21 = int_to_ptr.vmem [resolvable:$true] %s20_s21  ;;  %s293_s23 = int_to_ptr.vmem [resolvable:$true] %s29_s23 }
   0x6   :  { %s205_s26 = scalar_lea.hbm %s333_s0, 128 }
   0x7   :  { %p206_p0 = scmp.ne.s32.totalorder %s333_s0, %s205_s26  ;;  %p209_p1 = scmp.lt.u32.totalorder %s205_s26, %s333_s0 }
   0x9   :  { %p211_p2 = pnand %p209_p1, %p206_p0 }
   0xb   :  { %214 = shalt.err (!%p211_p2)
}
   0xc   :  { %s215_s30 = scalar_lea.vmem %s21_s21, 128  ;;  %p220_p4 = scmp.lt.s32.totalorder %s21_s21, %s21_s21 }
   0xd   :  { %p216_p3 = scmp.ne.s32.totalorder %s21_s21, %s215_s30  ;;  %p221_p5 = scmp.lt.s32.totalorder %s215_s30, %s215_s30 }
   0xf   :  { %p222_p6 = por %p221_p5, %p220_p4 }
  0x11   :  { %p223_p7 = pnand %p222_p6, %p216_p3 }
  0x13   :  { %226 = shalt.err (!%p223_p7)
}
  0x14   :  { %23 = dma.hbm_to_vmem [thread:$0]  %s333_s0, 128, %s21_s21, [#allocation4]  }
  0x15   :  { %s227_s10 = scalar_lea.hbm %s334_s1, 512 }
  0x16   :  { %p228_p8 = scmp.ne.s32.totalorder %s334_s1, %s227_s10  ;;  %p231_p9 = scmp.lt.u32.totalorder %s227_s10, %s334_s1 }
  0x18   :  { %p233_p10 = pnand %p231_p9, %p228_p8 }
  0x1a   :  { %236 = shalt.err (!%p233_p10)
}
  0x1b   :  { %s237_s15 = scalar_lea.vmem %s293_s23, 512  ;;  %p242_p12 = scmp.lt.s32.totalorder %s293_s23, %s293_s23 }
  0x1c   :  { %p238_p11 = scmp.ne.s32.totalorder %s293_s23, %s237_s15  ;;  %p243_p13 = scmp.lt.s32.totalorder %s237_s15, %s237_s15 }
  0x1e   :  { %p244_p0 = por %p243_p13, %p242_p12 }
  0x20   :  { %p245_p1 = pnand %p244_p0, %p238_p11 }
  0x22   :  { %248 = shalt.err (!%p245_p1)
}
  0x23   :  { %s255_s0 = smov 128   ;;  %s256_s16 = smov 8  }
  0x24   :  { %35 = dma.hbm_to_vmem [thread:$0]  %s334_s1, 512, %s293_s23, [#allocation6], %s255_s0, %s255_s0, %s256_s16  }
  0x25   :  { %249 = dma.done.wait [#allocation4], 128  }
  0x26   :  { %250 = vsyncadd [#allocation4], 4294967168 }
  0x27   :  { %251 = dma.done.wait [#allocation6], 512  }
  0x28   :  { %252 = vsyncadd [#allocation6], 4294966784  ;;  %v257_v1 = vmov 0.0|0.0   ;;  %vm258_vm0 = vmmov 0   ;;  %v259_v2 = vmov 0.0   ;;  %v49_v3 = vld [vmem:[#allocation5] sm:$0xff] }
  0x29   :  { %188 = vmatprep.subr.bf16.mxu0 %v257_v1  ;;  %185 = vmatprep.mubr.msk.f32.mxu0 %vm258_vm0, %v259_v2  ;;  %v50_v4 = vld [vmem:[#allocation5 + $0x8] sm:$0xff]  ;;  %v51_v5 = vld [vmem:[#allocation5 + $0x10] sm:$0xff]  ;;  %v52_v7 = vld [vmem:[#allocation5 + $0x18] sm:$0xff]  ;;  %vm60_vm1 = vcmask 261120   ;;  %vm159_vm2 = vcmask 7168  }
  0x2a   :  { %v189_v6 = vpack.c.bf16 %v50_v4, %v49_v3  ;;  %v192_v8 = vpack.c.bf16 %v52_v7, %v51_v5  ;;  %v48_v9 = vld [vmem:[#allocation3] sm:$0xff]  ;;  %v167_v10 = vld [vmem:[%s335_s2] ss:$0 sm:$0xff] }
  0x2b   :  { %v169_v14 = vld [vmem:[%s336_s3] ss:$0 sm:$0xff] }
  0x2c   :  { %190 = vmatpush3.bf16.msra.mxu0 %v189_v6  ;;  %v170_v17 = vld [vmem:[#allocation2] ss:$0 sm:$0xff] }
  0x2d   :  { %191 = vmatprep.subr.bf16.mxu0 %v257_v1 }
  0x30   :  { %193 = vmatpush3.bf16.msra.mxu0 %v192_v8 }
  0x33   :  { %186 = vmatmul.mubr.msk.f32.vlgmr.msra.gmra.mrb[0].mxu0 %vm60_vm1, %v48_v9 }
 0x106   :  { %v130_v11 = vpop.f32.mrb[0].mxu0 }
 0x107   :  { %v131_v12 = vadd.f32 %v167_v10, %v130_v11  ;;  %v187_v13 = vpop.f32.mrb[1].mxu0 }
 0x109   :  { %v134_v15 = vmax.f32 %v131_v12, 0.0 }
 0x10b   :  { %v142_v16 = vmul.f32 %v169_v14, %v134_v15 }
 0x10d   :  { %143 = vadd.xlane.f32.xlu0 %v142_v16 }
 0x19a   :  { %v144_v18 = vpop.xlane.xlu0 %143 }
 0x19b   :  { %v152_v19 = vadd.f32 %v170_v17, %v144_v18 }
 0x19d   :  { %v171_v20 = vmul.f32 -1.442695, %v152_v19 }
 0x19f   :  { %201 = vpow2.f32 %v171_v20 }
 0x1a9   :  { %v202_v21 = vpop.eup %201 }
 0x1aa   :  { %v156_v22 = vadd.f32 1.0, %v202_v21 }
 0x1ac   :  { %203 = vrcp.f32 %v156_v22 }
 0x1b6   :  { %v204_v23 = vpop.eup %203 }
 0x1b7   :  { %160 = vst.msk [vmem:[%s338_s5] sm:$0xff] %vm159_vm2, %v204_v23 }
 0x1b8   :  { %165 = vsyncpa [#allocation4], 1 }
 0x1b9   :  { %166 = vsyncpa [#allocation6], 1 }

</bundles_post_ra>
